<compile_context>
chip_gen: v7x
topology: tpu7x:2x2x1
jax: 0.10.0
libtpu: 0.0.40
codegen_flags: <defaults>
</compile_context>

<pallas_src>
import functools

import jax
import jax.numpy as jnp
from jax.experimental import pallas as pl
from jax.experimental.pallas import tpu as pltpu


GATE = 128  # lane-aligned width of each tree-LSTM gate block


def _round_up(x, m):
    return ((x + m - 1) // m) * m


def _reduce_kernel(x_ref, cl_ref, cr_ref, w_ref, o_ref):
    """One row-tile of the fused tree-LSTM reduce.

    x_ref : (TB, Kp)      bf16  [h_left | h_right | h_track | 1 | 0-pad]
    cl_ref: (TB, GATE)    f32   left cell state, zero-padded to GATE lanes
    cr_ref: (TB, GATE)    f32   right cell state, zero-padded to GATE lanes
    w_ref : (Kp, 5*GATE)  bf16  fused [W_left; W_right; W_track; b_left; 0-pad],
                                each gate padded to GATE lanes (a,i,f1,f2,o order)
    o_ref : (TB, 2*GATE)  f32   [h | c], lane-dense
    """
    gate = o_ref.shape[-1] // 2

    # Single fused MXU matmul (bias already folded in via the ones column).
    g = jnp.dot(x_ref[...], w_ref[...], preferred_element_type=jnp.float32)

    # Whole lane-tile gate slices (each gate occupies its own 128-lane block).
    a = g[:, 0 * gate:1 * gate]
    i = g[:, 1 * gate:2 * gate]
    f1 = g[:, 2 * gate:3 * gate]
    f2 = g[:, 3 * gate:4 * gate]
    o = g[:, 4 * gate:5 * gate]

    c = (jnp.tanh(a) * jax.nn.sigmoid(i)
         + jax.nn.sigmoid(f1) * cl_ref[...]
         + jax.nn.sigmoid(f2) * cr_ref[...])
    h = jax.nn.sigmoid(o) * jnp.tanh(c)

    o_ref[:, :gate] = h.astype(o_ref.dtype)
    o_ref[:, gate:] = c.astype(o_ref.dtype)


def pack_reduce_params(w_left, b_left, w_right, w_track, gate=GATE):
    """Fuse Reduce's three nn.Linear weights (+ bias) into one MXU-friendly matrix.

    w_left/w_right: (size, 5*size), w_track: (tsize, 5*size) — stored transposed
    (in, out) so columns keep PyTorch's chunk(5, 1) gate order (a, i, f1, f2, o).
    Returns a (Kp, 5*gate) bf16 matrix with each gate lane-padded to `gate`.
    """
    size = w_left.shape[0]
    tsize = w_track.shape[0]
    assert size <= gate
    k_in = 2 * size + tsize + 1                      # +1 row carries the bias
    kp = _round_up(k_in, 8)
    rows = jnp.concatenate(
        [w_left, w_right, w_track, b_left.reshape(1, -1)], axis=0)  # (k_in, 5*size)
    rows = jnp.pad(rows, ((0, kp - k_in), (0, 0)))                  # (kp, 5*size)
    rows = rows.reshape(kp, 5, size)
    rows = jnp.pad(rows, ((0, 0), (0, 0), (0, gate - size)))        # lane-align gates
    return rows.reshape(kp, 5 * gate).astype(jnp.bfloat16)


def spinn_reduce(left, right, tracking, w_packed, *, size, b_tile=32):
    """Batched Reduce.forward.

    left, right : (N, 2*size)  bundled [h | c] rows (one per tree node reduced)
    tracking    : (N, 2*tsize) bundled tracker state
    Returns (N, 2*size) = [h | c], i.e. the rows `unbundle` would split apart.
    All N reduce steps run through ONE pallas_call; the packed weights stay
    VMEM-resident across the grid.
    """
    assert b_tile % 8 == 0
    n = left.shape[0]
    hl, cl = left[:, :size], left[:, size:]
    hr, cr = right[:, :size], right[:, size:]
    tsize = tracking.shape[1] // 2
    ht = tracking[:, :tsize]

    kp = w_packed.shape[0]
    gate = w_packed.shape[1] // 5
    npad = _round_up(n, b_tile)

    ones = jnp.ones((n, 1), left.dtype)
    x = jnp.concatenate([hl, hr, ht, ones], axis=1)           # (n, 2*size+tsize+1)
    x = jnp.pad(x, ((0, npad - n), (0, kp - x.shape[1]))).astype(jnp.bfloat16)
    clp = jnp.pad(cl, ((0, npad - n), (0, gate - size))).astype(jnp.float32)
    crp = jnp.pad(cr, ((0, npad - n), (0, gate - size))).astype(jnp.float32)

    flops = 2 * npad * kp * 5 * gate
    bytes_accessed = (x.size * 2 + clp.size * 4 + crp.size * 4
                      + w_packed.size * 2 + npad * 2 * gate * 4)

    hc = pl.pallas_call(
        _reduce_kernel,
        out_shape=jax.ShapeDtypeStruct((npad, 2 * gate), jnp.float32),
        grid=(npad // b_tile,),
        in_specs=[
            pl.BlockSpec((b_tile, kp), lambda i: (i, 0)),
            pl.BlockSpec((b_tile, gate), lambda i: (i, 0)),
            pl.BlockSpec((b_tile, gate), lambda i: (i, 0)),
            pl.BlockSpec((kp, 5 * gate), lambda i: (0, 0)),   # weights stay resident
        ],
        out_specs=pl.BlockSpec((b_tile, 2 * gate), lambda i: (i, 0)),
        compiler_params=pltpu.CompilerParams(
            dimension_semantics=("parallel",)),
        cost_estimate=pl.CostEstimate(
            flops=flops,
            transcendentals=6 * npad * gate,
            bytes_accessed=bytes_accessed),
    )(x, clp, crp, w_packed)

    h = hc[:n, :size]
    c = hc[:n, gate:gate + size]
    return jnp.concatenate([h, c], axis=1)


def _reduce_ref(hl, cl, hr, cr, ht, w_left, b_left, w_right, w_track):
    """Pure-JAX f32 reference of Reduce.forward + tree_lstm (module semantics)."""
    lstm_in = hl @ w_left + b_left + hr @ w_right + ht @ w_track
    a, i, f1, f2, o = jnp.split(lstm_in, 5, axis=1)
    c = (jnp.tanh(a) * jax.nn.sigmoid(i)
         + jax.nn.sigmoid(f1) * cl
         + jax.nn.sigmoid(f2) * cr)
    h = jax.nn.sigmoid(o) * jnp.tanh(c)
    return h, c


if __name__ == "__main__":
    SIZE = 32       # d_hidden
    TRACKER = 16    # d_tracker
    N = 128         # tree-node reduce steps batched into one pallas_call
    B_TILE = 32     # rows per grid step

    key = jax.random.PRNGKey(0)
    k_wl, k_bl, k_wr, k_wt, k_l, k_r, k_t = jax.random.split(key, 7)

    # nn.Linear parameters, stored transposed (in_features, out_features).
    w_left = jax.random.normal(k_wl, (SIZE, 5 * SIZE), jnp.float32) * 0.1
    b_left = jax.random.normal(k_bl, (5 * SIZE,), jnp.float32) * 0.1
    w_right = jax.random.normal(k_wr, (SIZE, 5 * SIZE), jnp.float32) * 0.1
    w_track = jax.random.normal(k_wt, (TRACKER, 5 * SIZE), jnp.float32) * 0.1

    # Batched bundled states: [h | c] rows for N reduce steps.
    left = jax.random.normal(k_l, (N, 2 * SIZE), jnp.float32)
    right = jax.random.normal(k_r, (N, 2 * SIZE), jnp.float32)
    tracking = jax.random.normal(k_t, (N, 2 * TRACKER), jnp.float32)

    w_packed = pack_reduce_params(w_left, b_left, w_right, w_track)

    fwd = jax.jit(functools.partial(spinn_reduce, size=SIZE, b_tile=B_TILE))
    out = jax.block_until_ready(fwd(left, right, tracking, w_packed))

    # Correctness check against the f32 module-semantics reference.
    hl, cl = left[:, :SIZE], left[:, SIZE:]
    hr, cr = right[:, :SIZE], right[:, SIZE:]
    ht = tracking[:, :TRACKER]
    h_ref, c_ref = _reduce_ref(hl, cl, hr, cr, ht, w_left, b_left, w_right, w_track)
    ref = jnp.concatenate([h_ref, c_ref], axis=1)

    assert out.shape == (N, 2 * SIZE)
    max_err = float(jnp.max(jnp.abs(out - ref)))
    # bf16 MXU inputs vs f32 reference -> bf16-level tolerance.
    assert jnp.allclose(out, ref, atol=5e-2, rtol=5e-2), f"mismatch (max err {max_err})"
    print("KERNEL_OK")
</pallas_src>

<mosaic_0001>
module attributes {stable_mosaic.version = 11 : i64} {
  func.func @_reduce_kernel(%arg0: i32, %arg1: memref<32x88xbf16, #tpu.memory_space<vmem>>, %arg2: memref<32x128xf32, #tpu.memory_space<vmem>>, %arg3: memref<32x128xf32, #tpu.memory_space<vmem>>, %arg4: memref<88x640xbf16, #tpu.memory_space<vmem>>, %arg5: memref<32x256xf32, #tpu.memory_space<vmem>>) attributes {dimension_semantics = [#tpu.dimension_semantics<parallel>], iteration_bounds = array<i64: 4>, scalar_prefetch = 0 : i64, scratch_operands = 0 : i64, tpu.core_type = #tpu.core_type<tc>, window_params = [{transform_indices = @transform_0, window_bounds = array<i64: 32, 88>}, {transform_indices = @transform_1, window_bounds = array<i64: 32, 128>}, {transform_indices = @transform_2, window_bounds = array<i64: 32, 128>}, {pipeline_mode = #tpu.pipeline_mode<synchronous>, transform_indices = @transform_3, window_bounds = array<i64: 88, 640>}, {transform_indices = @transform_4, window_bounds = array<i64: 32, 256>}]} {
    %c0 = arith.constant 0 : index
    %c0_0 = arith.constant 0 : index
    %0 = vector.load %arg1[%c0, %c0_0] : memref<32x88xbf16, #tpu.memory_space<vmem>>, vector<32x88xbf16>
    %c0_1 = arith.constant 0 : index
    %c0_2 = arith.constant 0 : index
    %1 = vector.load %arg4[%c0_1, %c0_2] : memref<88x640xbf16, #tpu.memory_space<vmem>>, vector<88x640xbf16>
    %cst = arith.constant dense<0.000000e+00> : vector<32x640xf32>
    %2 = tpu.matmul %0, %1, %cst {dimension_numbers = #tpu.dot_dimension_numbers<[1], [0], [0], [1], [0, 0, 1, 1], [], []>} : vector<32x88xbf16>, vector<88x640xbf16>, vector<32x640xf32> -> vector<32x640xf32>
    %3 = vector.extract_strided_slice %2 {offsets = [0, 0], sizes = [32, 128], strides = [1, 1]} : vector<32x640xf32> to vector<32x128xf32>
    %4 = vector.extract_strided_slice %2 {offsets = [0, 128], sizes = [32, 128], strides = [1, 1]} : vector<32x640xf32> to vector<32x128xf32>
    %5 = vector.extract_strided_slice %2 {offsets = [0, 256], sizes = [32, 128], strides = [1, 1]} : vector<32x640xf32> to vector<32x128xf32>
    %6 = vector.extract_strided_slice %2 {offsets = [0, 384], sizes = [32, 128], strides = [1, 1]} : vector<32x640xf32> to vector<32x128xf32>
    %7 = vector.extract_strided_slice %2 {offsets = [0, 512], sizes = [32, 128], strides = [1, 1]} : vector<32x640xf32> to vector<32x128xf32>
    %8 = math.tanh %3 : vector<32x128xf32>
    %9 = arith.negf %4 : vector<32x128xf32>
    %10 = math.exp %9 : vector<32x128xf32>
    %cst_3 = arith.constant 1.000000e+00 : f32
    %11 = vector.broadcast %cst_3 : f32 to vector<32x128xf32>
    %12 = arith.addf %11, %10 : vector<32x128xf32>
    %13 = arith.divf %11, %12 : vector<32x128xf32>
    %14 = arith.mulf %8, %13 : vector<32x128xf32>
    %15 = arith.negf %5 : vector<32x128xf32>
    %16 = math.exp %15 : vector<32x128xf32>
    %cst_4 = arith.constant 1.000000e+00 : f32
    %17 = vector.broadcast %cst_4 : f32 to vector<32x128xf32>
    %18 = arith.addf %17, %16 : vector<32x128xf32>
    %19 = arith.divf %17, %18 : vector<32x128xf32>
    %c0_5 = arith.constant 0 : index
    %c0_6 = arith.constant 0 : index
    %20 = vector.load %arg2[%c0_5, %c0_6] : memref<32x128xf32, #tpu.memory_space<vmem>>, vector<32x128xf32>
    %21 = arith.mulf %19, %20 : vector<32x128xf32>
    %22 = arith.addf %14, %21 : vector<32x128xf32>
    %23 = arith.negf %6 : vector<32x128xf32>
    %24 = math.exp %23 : vector<32x128xf32>
    %cst_7 = arith.constant 1.000000e+00 : f32
    %25 = vector.broadcast %cst_7 : f32 to vector<32x128xf32>
    %26 = arith.addf %25, %24 : vector<32x128xf32>
    %27 = arith.divf %25, %26 : vector<32x128xf32>
    %c0_8 = arith.constant 0 : index
    %c0_9 = arith.constant 0 : index
    %28 = vector.load %arg3[%c0_8, %c0_9] : memref<32x128xf32, #tpu.memory_space<vmem>>, vector<32x128xf32>
    %29 = arith.mulf %27, %28 : vector<32x128xf32>
    %30 = arith.addf %22, %29 : vector<32x128xf32>
    %31 = arith.negf %7 : vector<32x128xf32>
    %32 = math.exp %31 : vector<32x128xf32>
    %cst_10 = arith.constant 1.000000e+00 : f32
    %33 = vector.broadcast %cst_10 : f32 to vector<32x128xf32>
    %34 = arith.addf %33, %32 : vector<32x128xf32>
    %35 = arith.divf %33, %34 : vector<32x128xf32>
    %36 = math.tanh %30 : vector<32x128xf32>
    %37 = arith.mulf %35, %36 : vector<32x128xf32>
    %c0_11 = arith.constant 0 : index
    %c0_12 = arith.constant 0 : index
    %38 = vector.load %arg5[%c0_11, %c0_12] : memref<32x256xf32, #tpu.memory_space<vmem>>, vector<32x128xf32>
    tpu.vector_store %arg5[%c0_11, %c0_12], %37 {strides = array<i32>} : memref<32x256xf32, #tpu.memory_space<vmem>>, vector<32x128xf32>,
    %c0_13 = arith.constant 0 : index
    %c128 = arith.constant 128 : index
    %39 = vector.load %arg5[%c0_13, %c128] : memref<32x256xf32, #tpu.memory_space<vmem>>, vector<32x128xf32>
    tpu.vector_store %arg5[%c0_13, %c128], %30 {strides = array<i32>} : memref<32x256xf32, #tpu.memory_space<vmem>>, vector<32x128xf32>,
    return
  }
  func.func @transform_0(%arg0: i32) -> (i32, i32) {
    %c0_i32 = arith.constant 0 : i32
    %c0_i32_0 = arith.constant 0 : i32
    return %arg0, %c0_i32 : i32, i32
  }
  func.func @transform_1(%arg0: i32) -> (i32, i32) {
    %c0_i32 = arith.constant 0 : i32
    %c0_i32_0 = arith.constant 0 : i32
    return %arg0, %c0_i32 : i32, i32
  }
  func.func @transform_2(%arg0: i32) -> (i32, i32) {
    %c0_i32 = arith.constant 0 : i32
    %c0_i32_0 = arith.constant 0 : i32
    return %arg0, %c0_i32 : i32, i32
  }
  func.func @transform_3(%arg0: i32) -> (i32, i32) {
    %c0_i32 = arith.constant 0 : i32
    %c0_i32_0 = arith.constant 0 : i32
    %c0_i32_1 = arith.constant 0 : i32
    return %c0_i32, %c0_i32_0 : i32, i32
  }
  func.func @transform_4(%arg0: i32) -> (i32, i32) {
    %c0_i32 = arith.constant 0 : i32
    %c0_i32_0 = arith.constant 0 : i32
    return %arg0, %c0_i32 : i32, i32
  }
}

</mosaic_0001>

<bundles_post_ra>
// kernel: spinn_reduce.1
= control target key start
LH: loop header
LB: loop body
LE: loop exit
PB: predicated region body
PF: predicated region fallthrough
CT: control target
= control target key end

     0   :  { %s1105_s15 = smov 0   ;;  %s1262_s0 = inlined_call_operand.vmem [shape: bf16[128,88], index: 0, kind: input, shape index: {}]   ;;  %s1263_s1 = inlined_call_operand.vmem [shape: f32[128,128], index: 1, kind: input, shape index: {}]   ;;  %s1264_s2 = inlined_call_operand.vmem [shape: f32[128,128], index: 2, kind: input, shape index: {}]   ;;  %s1265_s3 = inlined_call_operand.vmem [shape: bf16[88,640], index: 3, kind: input, shape index: {}]   ;;  %s1266_s4 = inlined_call_operand.vmem [shape: f32[128,256], index: 4, kind: output, shape index: {}]  }
   0x1 LB: > { %s842_s16 = sadd.s32 4294967295, %s1077_s15   ;;  %p846_p0 = scmp.ge.s32.totalorder %s1077_s15, 1  ;;  %s1077_s15 = sphi %s1105_s15, %s14_s15  }
   0x2   : > { %p185_p1 = scmp.lt.s32.totalorder %s1077_s15, 5 }
   0x4   : > { %p186_p2 = pnand %p846_p0, %p185_p1 }
   0x5   : > { %v949_v0 = vld [vmem:[%s1265_s3 + $0x4] ss:$20 sps:$4 sm:$0xff] (!%p186_p2)   ;;  %v951_v1 = vld [vmem:[%s1265_s3 + $0xc] ss:$20 sps:$4 sm:$0xff] (!%p186_p2)   ;;  %v1079_v2 = vmov (!%p186_p2), 0   ;;  %s847_s21 = sshll.u32 (!%p186_p2), %s842_s16, 2 }
   0x6   : > { %189 = sbr.rel (%p186_p2) target bundleno = 307 (0x133), region = 36  ;;  %493 = vmatprep.mubr.bf16.mxu0 (!%p186_p2), %v1079_v2  ;;  %546 = vmatprep.mubr.bf16.mxu1 (!%p186_p2), %v1079_v2  ;;  %v953_v3 = vld [vmem:[%s1265_s3] ss:$20 sps:$4 sm:$0xff] (!%p186_p2)   ;;  %v954_v4 = vld [vmem:[%s1265_s3 + $0x8] ss:$20 sps:$4 sm:$0xff] (!%p186_p2)   ;;  %p223_p3 = scmp.lt.s32.totalorder (!%p186_p2), %s847_s21, 15 }
   0x7   : > { %461 = vmatprep.subr.bf16.mxu0 (!%p186_p2), %v949_v0  ;;  %514 = vmatprep.subr.bf16.mxu1 (!%p186_p2), %v951_v1  ;;  %v955_v5 = vld [vmem:[%s1265_s3 + $0x2c] ss:$20 sps:$4 sm:$0xff] (!%p186_p2)   ;;  %v957_v6 = vld [vmem:[%s1265_s3 + $0x34] ss:$20 sps:$4 sm:$0xff] (!%p186_p2)   ;;  %v960_v8 = vld [vmem:[%s1265_s3 + $0x30] ss:$20 sps:$4 sm:$0xff] (!%p186_p2)  }
   0x8   : > { %462 = vmatpush1.bf16.msra.mxu0 (!%p186_p2), %v953_v3  ;;  %515 = vmatpush1.bf16.msra.mxu1 (!%p186_p2), %v954_v4  ;;  %v959_v7 = vld [vmem:[%s1265_s3 + $0x28] ss:$20 sps:$4 sm:$0xff] (!%p186_p2)   ;;  %v965_v11 = vld [vmem:[%s1265_s3 + $0x50] ss:$20 sps:$4 sm:$0xff] (!%p186_p2)   ;;  %v966_v12 = vld [vmem:[%s1265_s3 + $0x58] ss:$20 sps:$4 sm:$0xff] (!%p186_p2)  }
   0x9   : > { %463 = vmatprep.subr.bf16.mxu0 (!%p186_p2), %v955_v5  ;;  %516 = vmatprep.subr.bf16.mxu1 (!%p186_p2), %v957_v6  ;;  %v961_v9 = vld [vmem:[%s1265_s3 + $0x54] ss:$20 sps:$4 sm:$0xff] (!%p186_p2)   ;;  %v963_v10 = vld [vmem:[%s1265_s3 + $0x5c] ss:$20 sps:$4 sm:$0xff] (!%p186_p2)   ;;  %v969_v14 = vld [vmem:[%s1265_s3 + $0x84] ss:$20 sps:$4 sm:$0xff] (!%p186_p2)  }
   0xa   : > { %v967_v13 = vld [vmem:[%s1265_s3 + $0x7c] ss:$20 sps:$4 sm:$0xff] (!%p186_p2)   ;;  %v971_v15 = vld [vmem:[%s1265_s3 + $0x78] ss:$20 sps:$4 sm:$0xff] (!%p186_p2)   ;;  %v972_v16 = vld [vmem:[%s1265_s3 + $0x80] ss:$20 sps:$4 sm:$0xff] (!%p186_p2)  }
   0xb   : > { %v973_v17 = vld [vmem:[%s1265_s3 + $0xa4] ss:$20 sps:$4 sm:$0xff] (!%p186_p2)   ;;  %v975_v18 = vld [vmem:[%s1265_s3 + $0xac] ss:$20 sps:$4 sm:$0xff] (!%p186_p2)   ;;  %v283_v20 = vld [vmem:[%s1265_s3 + $0xd0] sm:$0xff] (!%p186_p2)  ;;  %vm445_vm0 = vcmask (!%p186_p2), 1043456  }
   0xc   : > { %464 = vmatpush1.bf16.msra.mxu0 (!%p186_p2), %v959_v7  ;;  %517 = vmatpush1.bf16.msra.mxu1 (!%p186_p2), %v960_v8  ;;  %v282_v19 = vld [vmem:[%s1265_s3 + $0xc8] sm:$0xff] (!%p186_p2)  ;;  %v977_v21 = vld [vmem:[%s1265_s3 + $0xa0] ss:$20 sps:$4 sm:$0xff] (!%p186_p2)   ;;  %v886_v24 = vcombine.high (!%p186_p2), %v283_v20, %v283_v20  ;;  %v885_v26 = vcombine.low (!%p186_p2), %v283_v20, %v283_v20  ;;  %v984_v29 = vld [vmem:[%s1265_s3 + $0x10] ss:$20 sps:$4 sm:$0xff] (!%p186_p2)   ;;  %vm438_vm1 = vcmask (!%p186_p2), 719872  }
   0xd   : > { %s1268_s21 = smov (!%p223_p3, %s847_s21), 15  ;;  %465 = vmatprep.subr.bf16.mxu0 %v961_v9  ;;  %518 = vmatprep.subr.bf16.mxu1 %v963_v10  ;;  %v978_v22 = vld [vmem:[%s1265_s3 + $0xa8] ss:$20 sps:$4 sm:$0xff]   ;;  %v884_v23 = vcombine.high %v282_v19, %v282_v19  ;;  %v883_v25 = vcombine.low %v282_v19, %v282_v19  ;;  %v985_v31 = vld [vmem:[%s1265_s3 + $0x38] ss:$20 sps:$4 sm:$0xff]  }
   0xe   : > { %s848_s22 = sshll.u32 %s1268_s21, 2  ;;  %v453_v28 = vsel %vm445_vm0, %v885_v26, 0  ;;  %v987_v32 = vld [vmem:[%s1265_s3 + $0x60] ss:$20 sps:$4 sm:$0xff]   ;;  %v988_v34 = vld [vmem:[%s1265_s3 + $0x88] ss:$20 sps:$4 sm:$0xff]  }
   0xf   : > { %s1178_s9 = scalar_lea.vmem %s1262_s0, %s848_s22  ;;  %v447_v27 = vsel %vm445_vm0, %v883_v25, 0  ;;  %v989_v35 = vld [vmem:[%s1265_s3 + $0xb0] ss:$20 sps:$4 sm:$0xff]   ;;  %v990_v36 = vld [vmem:[%s1265_s3 + $0xd8] ss:$0 sps:$4 sm:$0xff]   ;;  %s850_s30 = sshll.u32 %s1268_s21, 3 }
  0x10   : > { %466 = vmatpush1.bf16.msra.mxu0 %v965_v11  ;;  %519 = vmatpush1.bf16.msra.mxu1 %v966_v12  ;;  %v983_v30 = vld [vmem:[%s1178_s9] sm:$0xff]   ;;  %v986_v33 = vld [vmem:[%s1178_s9 + $0x8] sm:$0xff]   ;;  %v459_v37 = vsel %vm445_vm0, %v990_v36, 0  ;;  %s1229_s7 = scalar_lea.vmem %s1263_s1, %s850_s30  ;;  %s1235_s10 = scalar_lea.vmem %s1264_s2, %s850_s30 }
  0x11   : > { %467 = vmatprep.subr.bf16.mxu0 %v967_v13  ;;  %520 = vmatprep.subr.bf16.mxu1 %v969_v14  ;;  %s914_s11 = sshll.u32 %s1268_s21, 4 }
  0x12   : > { %s1244_s21 = scalar_lea.vmem %s1266_s4, %s914_s11 }
  0x14   : > { %468 = vmatpush1.bf16.msra.mxu0 %v971_v15  ;;  %521 = vmatpush1.bf16.msra.mxu1 %v972_v16 }
  0x15   : > { %469 = vmatprep.subr.bf16.mxu0 %v973_v17  ;;  %522 = vmatprep.subr.bf16.mxu1 %v975_v18 }
  0x18   : > { %470 = vmatpush1.bf16.msra.mxu0 %v977_v21  ;;  %523 = vmatpush1.bf16.msra.mxu1 %v978_v22  ;;  %v672_v22 = vld [vmem:[%s1229_s7] sm:$0xff] }
  0x19   : > { %888 = vmatprep.subr.msk.bf16.mxu0 %vm445_vm0, %v884_v23  ;;  %891 = vmatprep.subr.msk.bf16.mxu1 %vm445_vm0, %v886_v24 }
  0x1c   : > { %472 = vmatpush1.bf16.msra.mxu0 %v447_v27  ;;  %525 = vmatpush1.bf16.msra.mxu1 %v453_v28 }
  0x1d   : > { %923 = vmatprep.subr.bf16.mxu0 %v984_v29 }
  0x1f   : > { %889 = vmatmul.mubr.msk.bf16.vlgmr.msra.gmra.mrb[0].mxu0 %vm438_vm1, %v983_v30  ;;  %892 = vmatmul.mubr.msk.bf16.vlgmr.msra.gmra.mrb[0].mxu1 %vm438_vm1, %v983_v30 }
  0x20   : > { %924 = vmatpush3.bf16.msra.mxu0 %v984_v29  ;;  %503 = vmatprep.mubr.bf16.mxu0 %v1079_v2 }
  0x21   : > { %925 = vmatprep.subr.bf16.mxu0 %v985_v31  ;;  %556 = vmatprep.mubr.bf16.mxu1 %v1079_v2 }
  0x24   : > { %926 = vmatpush3.bf16.msra.mxu0 %v985_v31 }
  0x25   : > { %927 = vmatprep.subr.bf16.mxu0 %v987_v32 }
  0x27   : > { %890 = vmatmul.mubr.msk.bf16.gmra.mrb[4].mxu0 %vm438_vm1, %v986_v33  ;;  %893 = vmatmul.mubr.msk.bf16.gmra.mrb[4].mxu1 %vm438_vm1, %v986_v33 }
  0x28   : > { %928 = vmatpush3.bf16.msra.mxu0 %v987_v32  ;;  %935 = vmatprep.mubr.msk.bf16.mxu0 %vm438_vm1, %v983_v30 }
  0x29   : > { %929 = vmatprep.subr.bf16.mxu0 %v988_v34 }
  0x2c   : > { %930 = vmatpush3.bf16.msra.mxu0 %v988_v34  ;;  %v708_v34 = vld [vmem:[%s1235_s10] sm:$0xff] }
  0x2d   : > { %931 = vmatprep.subr.bf16.mxu0 %v989_v35 }
  0x30   : > { %932 = vmatpush3.bf16.msra.mxu0 %v989_v35 }
  0x31   : > { %939 = vmatprep.subr.msk.bf16.mxu0 %vm445_vm0, %v990_v36 }
  0x34   : > { %934 = vmatpush3.bf16.msra.mxu0 %v459_v37 }
  0x37   : > { %936 = vmatmul.mubr.msk.bf16.vlgmr.msra.gmra.mrb[8].mxu0 %vm438_vm1, %v986_v33 }
  0xf2   : > { %v495_v38 = vpop.f32.mrb[0].mxu0  ;;  %v548_v39 = vpop.f32.mrb[0].mxu1 }
  0xf3   : > { %v900_v40 = vmul.f32 -1.442695, %v548_v39  ;;  %v497_v41 = vpop.f32.mrb[1].mxu0  ;;  %v550_v42 = vpop.f32.mrb[1].mxu1 }
  0xf4   : > { %v896_v43 = vmul.f32 -1.442695, %v497_v41  ;;  %v904_v44 = vmul.f32 -1.442695, %v550_v42  ;;  %v499_v45 = vpop.f32.mrb[2].mxu0  ;;  %v552_v46 = vpop.f32.mrb[2].mxu1 }
  0xf5   : > { %991 = vpow2.f32 %v900_v40  ;;  %v901_v47 = vmul.f32 -1.442695, %v552_v46  ;;  %v501_v48 = vpop.f32.mrb[3].mxu0  ;;  %v554_v49 = vpop.f32.mrb[3].mxu1 }
  0xf6   : > { %993 = vpow2.f32 %v896_v43  ;;  %v897_v50 = vmul.f32 -1.442695, %v501_v48  ;;  %v905_v51 = vmul.f32 -1.442695, %v554_v49  ;;  %v709_v48 = vld [vmem:[%s1235_s10 + $0x8] sm:$0xff] }
  0xf7   : > { %995 = vpow2.f32 %v904_v44 }
  0xf8   : > { %997 = vtanh.f32 %v495_v38  ;;  %v673_v38 = vld [vmem:[%s1229_s7 + $0x8] sm:$0xff] }
  0xf9   : > { %999 = vpow2.f32 %v901_v47 }
  0xfa   : > { %1001 = vpow2.f32 %v897_v50  ;;  %v505_v52 = vpop.f32.mrb[4].mxu0  ;;  %v558_v53 = vpop.f32.mrb[4].mxu1 }
  0xfb   : > { %1003 = vpow2.f32 %v905_v51  ;;  %v902_v54 = vmul.f32 -1.442695, %v558_v53  ;;  %v507_v55 = vpop.f32.mrb[5].mxu0  ;;  %v560_v56 = vpop.f32.mrb[5].mxu1 }
  0xfc   : > { %1005 = vtanh.f32 %v499_v45  ;;  %v898_v57 = vmul.f32 -1.442695, %v507_v55  ;;  %v906_v58 = vmul.f32 -1.442695, %v560_v56  ;;  %v1223_v59 = vpop.f32.mrb[6].mxu0  ;;  %v562_v60 = vpop.f32.mrb[6].mxu1 }
  0xfd   : > { %1007 = vpow2.f32 %v902_v54  ;;  %v903_v61 = vmul.f32 -1.442695, %v562_v60  ;;  %v511_v62 = vpop.f32.mrb[7].mxu0  ;;  %v564_v63 = vpop.f32.mrb[7].mxu1  ;;  %v710_v60 = vld [vmem:[%s1235_s10 + $0x10] sm:$0xff] }
  0xfe   : > { %1009 = vpow2.f32 %v898_v57  ;;  %v899_v5 = vmul.f32 -1.442695, %v511_v62  ;;  %v907_v13 = vmul.f32 -1.442695, %v564_v63 }
  0xff   : > { %v992_v0 = vpop.eup %991  ;;  %1011 = vpow2.f32 %v906_v58 }
 0x100   : > { %v994_v1 = vpop.eup %993  ;;  %v660_v2 = vadd.f32 1.0, %v992_v0  ;;  %1013 = vtanh.f32 %v505_v52  ;;  %v674_v52 = vld [vmem:[%s1229_s7 + $0x10] sm:$0xff] }
 0x101   : > { %v996_v3 = vpop.eup %995  ;;  %v632_v4 = vadd.f32 1.0, %v994_v1  ;;  %1015 = vpow2.f32 %v903_v61 }
 0x102   : > { %v998_v6 = vpop.eup %997  ;;  %1017 = vrcp.f32 %v660_v2  ;;  %v696_v7 = vadd.f32 1.0, %v996_v3 }
 0x103   : > { %v1000_v8 = vpop.eup %999  ;;  %1019 = vrcp.f32 %v632_v4  ;;  %v675_v4 = vld [vmem:[%s1229_s7 + $0x18] sm:$0xff] }
 0x104   : > { %v1002_v9 = vpop.eup %1001  ;;  %1021 = vrcp.f32 %v696_v7  ;;  %v661_v10 = vadd.f32 1.0, %v1000_v8 }
 0x105   : > { %v1004_v11 = vpop.eup %1003  ;;  %v633_v12 = vadd.f32 1.0, %v1002_v9  ;;  %1023 = vpow2.f32 %v899_v5 }
 0x106   : > { %v1006_v14 = vpop.eup %1005  ;;  %1025 = vrcp.f32 %v661_v10  ;;  %v697_v15 = vadd.f32 1.0, %v1004_v11 }
 0x107   : > { %v1008_v16 = vpop.eup %1007  ;;  %1027 = vrcp.f32 %v633_v12 }
 0x108   : > { %v1010_v17 = vpop.eup %1009  ;;  %1029 = vrcp.f32 %v697_v15  ;;  %v662_v18 = vadd.f32 1.0, %v1008_v16  ;;  %v711_v16 = vld [vmem:[%s1235_s10 + $0x18] sm:$0xff] }
 0x109   : > { %v1012_v19 = vpop.eup %1011  ;;  %v634_v20 = vadd.f32 1.0, %v1010_v17  ;;  %1031 = vpow2.f32 %v907_v13 }
 0x10a   : > { %v1014_v21 = vpop.eup %1013  ;;  %1033 = vrcp.f32 %v662_v18  ;;  %v698_v23 = vadd.f32 1.0, %v1012_v19  ;;  %v937_v24 = vpop.f32.mrb[8].mxu0 }
 0x10b   : > { %v1016_v25 = vpop.eup %1015  ;;  %1035 = vrcp.f32 %v634_v20  ;;  %v910_v26 = vmul.f32 -1.442695, %v937_v24  ;;  %v601_v27 = vpop.f32.mrb[9].mxu0 }
 0x10c   : > { %v1018_v28 = vpop.eup %1017  ;;  %1037 = vrcp.f32 %v698_v23  ;;  %v663_v29 = vadd.f32 1.0, %v1016_v25  ;;  %v908_v30 = vmul.f32 -1.442695, %v601_v27  ;;  %v938_v31 = vpop.f32.mrb[10].mxu0 }
 0x10d   : > { %v1020_v32 = vpop.eup %1019  ;;  %v676_v33 = vmul.f32 %v1018_v28, %v672_v22  ;;  %1039 = vpow2.f32 %v910_v26  ;;  %v604_v35 = vpop.f32.mrb[11].mxu0  ;;  %v911_v41 = vmul.f32 -1.442695, %v938_v31 }
 0x10e   : > { %v1022_v36 = vpop.eup %1021  ;;  %v644_v37 = vmul.f32 %v1020_v32, %v998_v6  ;;  %1041 = vrcp.f32 %v663_v29  ;;  %v909_v39 = vmul.f32 -1.442695, %v604_v35 }
 0x10f   : > { %v1024_v40 = vpop.eup %1023  ;;  %1043 = vpow2.f32 %v908_v30  ;;  %v712_v44 = vmul.f32 %v1022_v36, %v708_v34 }
 0x110   : > { %v1026_v42 = vpop.eup %1025  ;;  %v680_v43 = vadd.f32 %v676_v33, %v644_v37  ;;  %1045 = vtanh.f32 %v1223_v59  ;;  %v635_v45 = vadd.f32 1.0, %v1024_v40 }
 0x111   : > { %v1028_v46 = vpop.eup %1027  ;;  %v677_v47 = vmul.f32 %v1026_v42, %v673_v38  ;;  %1047 = vpow2.f32 %v909_v39 }
 0x112   : > { %v1030_v49 = vpop.eup %1029  ;;  %v716_v50 = vadd.f32 %v712_v44, %v680_v43  ;;  %v645_v51 = vmul.f32 %v1028_v46, %v1006_v14  ;;  %1049 = vrcp.f32 %v635_v45 }
 0x113   : > { %v1032_v53 = vpop.eup %1031  ;;  %1051 = vpow2.f32 %v911_v41  ;;  %v713_v56 = vmul.f32 %v1030_v49, %v709_v48 }
 0x114   : > { %v1034_v54 = vpop.eup %1033  ;;  %756 = vst [vmem:[%s1244_s21 + $0x8] sm:$0xff] %v716_v50  ;;  %v681_v55 = vadd.f32 %v677_v47, %v645_v51  ;;  %v699_v57 = vadd.f32 1.0, %v1032_v53 }
 0x115   : > { %v1036_v58 = vpop.eup %1035  ;;  %v678_v59 = vmul.f32 %v1034_v54, %v674_v52 }
 0x116   : > { %v1038_v61 = vpop.eup %1037  ;;  %v717_v62 = vadd.f32 %v713_v56, %v681_v55  ;;  %v646_v63 = vmul.f32 %v1036_v58, %v1014_v21  ;;  %1053 = vrcp.f32 %v699_v57 }
 0x117   : > { %v1040_v0 = vpop.eup %1039  ;;  %v714_v3 = vmul.f32 %v1038_v61, %v710_v60 }
 0x118   : > { %v1042_v1 = vpop.eup %1041  ;;  %757 = vst [vmem:[%s1244_s21 + $0x18] sm:$0xff] %v717_v62  ;;  %v682_v2 = vadd.f32 %v678_v59, %v646_v63  ;;  %v734_v5 = vadd.f32 1.0, %v1040_v0 }
 0x119   : > { %v1044_v6 = vpop.eup %1043  ;;  %v679_v11 = vmul.f32 %v1042_v1, %v675_v4 }
 0x11a   : > { %v1046_v7 = vpop.eup %1045  ;;  %v718_v8 = vadd.f32 %v714_v3, %v682_v2  ;;  %1055 = vrcp.f32 %v734_v5  ;;  %v732_v9 = vadd.f32 1.0, %v1044_v6 }
 0x11b   : > { %v1048_v10 = vpop.eup %1047  ;;  %1057 = vtanh.f32 %v716_v50 }
 0x11c   : > { %v1050_v12 = vpop.eup %1049  ;;  %1059 = vtanh.f32 %v718_v8  ;;  %758 = vst [vmem:[%s1244_s21 + $0x28] sm:$0xff] %v718_v8  ;;  %v733_v13 = vadd.f32 1.0, %v1048_v10 }
 0x11d   : > { %v1052_v14 = vpop.eup %1051  ;;  %v647_v15 = vmul.f32 %v1050_v12, %v1046_v7  ;;  %1061 = vrcp.f32 %v732_v9 }
 0x11e   : > { %1063 = vtanh.f32 %v717_v62  ;;  %v735_v19 = vadd.f32 1.0, %v1052_v14 }
 0x11f   : > { %v683_v17 = vadd.f32 %v679_v11, %v647_v15  ;;  %1065 = vrcp.f32 %v733_v13 }
 0x120   : > { %v1054_v18 = vpop.eup %1053  ;;  %1067 = vrcp.f32 %v735_v19 }
 0x121   : > { %v715_v20 = vmul.f32 %v1054_v18, %v711_v16 }
 0x123   : > { %v719_v21 = vadd.f32 %v715_v20, %v683_v17 }
 0x124   : > { %v1056_v22 = vpop.eup %1055 }
 0x125   : > { %v1058_v23 = vpop.eup %1057  ;;  %1069 = vtanh.f32 %v719_v21  ;;  %759 = vst [vmem:[%s1244_s21 + $0x38] sm:$0xff] %v719_v21 }
 0x126   : > { %v1060_v24 = vpop.eup %1059 }
 0x127   : > { %v1062_v25 = vpop.eup %1061  ;;  %v750_v26 = vmul.f32 %v1060_v24, %v1056_v22 }
 0x128   : > { %v1064_v27 = vpop.eup %1063  ;;  %v748_v28 = vmul.f32 %v1062_v25, %v1058_v23 }
 0x129   : > { %v1066_v29 = vpop.eup %1065  ;;  %754 = vst [vmem:[%s1244_s21 + $0x20] sm:$0xff] %v750_v26 }
 0x12a   : > { %752 = vst [vmem:[%s1244_s21] sm:$0xff] %v748_v28  ;;  %v749_v30 = vmul.f32 %v1066_v29, %v1064_v27  ;;  %v1068_v31 = vpop.eup %1067 }
 0x12c   : > { %753 = vst [vmem:[%s1244_s21 + $0x10] sm:$0xff] %v749_v30 }
 0x12f   : > { %v1070_v32 = vpop.eup %1069 }
 0x130   : > { %v751_v33 = vmul.f32 %v1070_v32, %v1068_v31 }
 0x132   : > { %755 = vst [vmem:[%s1244_s21 + $0x30] sm:$0xff] %v751_v33 }
 0x133 PF: > { %s14_s15 = sadd.s32 1, %s1077_s15  }
 0x134   : > { %p11_p4 = scmp.ge.s32.totalorder %s14_s15, 6  }
 0x136   :  { %13 = sbr.rel (!%p11_p4) target bundleno = 1 (0x1), region = 72 }

</bundles_post_ra>
